<compile_context>
chip_gen: v7x
topology: tpu7x:2x2x1
jax: 0.10.0
libtpu: 0.0.40
codegen_flags: <defaults>
</compile_context>

<pallas_src>
import functools

import jax
import jax.numpy as jnp
from jax.experimental import pallas as pl
from jax.experimental.pallas import tpu as pltpu


def _ff_leakyrelu_bn_kernel(x_ref, w_ref, p_ref, o_ref, acc_ref, *,
                            negative_slope):
    """One (tm, tn) output tile; K (reduction) is the last grid axis."""
    k = pl.program_id(2)

    @pl.when(k == 0)
    def _init():
        acc_ref[...] = jnp.zeros_like(acc_ref)

    # Dropout(p=0.01) in eval mode is the identity.
    # TODO(synk): train-mode dropout mask (pltpu.prng_*) + batch-stat BN not implemented.
    # MXU matmul: cast the activation tile to the weight dtype (bf16) in VMEM,
    # accumulate in f32.
    x_blk = x_ref[...].astype(w_ref.dtype)
    acc_ref[...] += jnp.dot(x_blk, w_ref[...],
                            preferred_element_type=jnp.float32)

    @pl.when(k == pl.num_programs(2) - 1)
    def _epilogue():
        bias = p_ref[0:1, :]       # [1, tn]
        scale = p_ref[1:2, :]      # [1, tn]
        shift = p_ref[2:3, :]      # [1, tn]
        y = acc_ref[...] + bias                                  # Linear bias
        y = jnp.where(y >= 0.0, y, negative_slope * y)           # LeakyReLU
        o_ref[...] = (y * scale + shift).astype(o_ref.dtype)     # BN (eval)


def prepare_ff_block_params(w, b, gamma, beta, running_mean, running_var,
                            eps=1e-5, compute_dtype=jnp.bfloat16):
    """Call ONCE at parameter-load time (not per forward).

    Returns:
      w_t:    [in_features, out_features] weight in `compute_dtype` (MXU dtype)
      packed: [3, out_features] f32 buffer with rows (bias, bn_scale, bn_shift)
    """
    w_t = jnp.asarray(w, jnp.float32).T.astype(compute_dtype)
    scale = jnp.asarray(gamma, jnp.float32) / jnp.sqrt(
        jnp.asarray(running_var, jnp.float32) + eps)
    shift = jnp.asarray(beta, jnp.float32) - jnp.asarray(
        running_mean, jnp.float32) * scale
    packed = jnp.stack(
        [jnp.asarray(b, jnp.float32), scale, shift], axis=0)     # [3, OUT]
    return w_t, packed


@functools.partial(jax.jit,
                   static_argnames=("tm", "tn", "tk", "negative_slope"))
def feedforward_leaky_relu_block(x, w_t, packed_params, *,
                                 tm=256, tn=512, tk=512,
                                 negative_slope=0.01):
    """Fused dropout(eval) -> Linear -> LeakyReLU -> BatchNorm1d(eval)."""
    B, IN = x.shape
    IN_w, OUT = w_t.shape
    assert IN == IN_w and packed_params.shape == (3, OUT)

    # Clamp tiles to the problem size; require exact tiling (pad upstream for
    # ragged shapes).  Per-chip sweeps: v7x prefers tn>=512 (HBM-bound),
    # v5e prefers narrower tn (128-256) against its single vst slot.
    tm = min(tm, B)
    tn = min(tn, OUT)
    tk = min(tk, IN)
    assert B % tm == 0 and OUT % tn == 0 and IN % tk == 0

    grid = (B // tm, OUT // tn, IN // tk)

    cost = pl.CostEstimate(
        flops=2 * B * IN * OUT,
        transcendentals=0,
        bytes_accessed=(x.size * x.dtype.itemsize
                        + w_t.size * w_t.dtype.itemsize
                        + packed_params.size * 4
                        + B * OUT * 4),
    )

    kernel = functools.partial(_ff_leakyrelu_bn_kernel,
                               negative_slope=negative_slope)

    return pl.pallas_call(
        kernel,
        out_shape=jax.ShapeDtypeStruct((B, OUT), jnp.float32),
        grid_spec=pltpu.PrefetchScalarGridSpec(
            num_scalar_prefetch=0,
            grid=grid,
            in_specs=[
                pl.BlockSpec((tm, tk), lambda i, j, k: (i, k)),   # x
                pl.BlockSpec((tk, tn), lambda i, j, k: (k, j)),   # w^T
                pl.BlockSpec((3, tn), lambda i, j, k: (0, j)),    # bias/scale/shift
            ],
            out_specs=pl.BlockSpec((tm, tn), lambda i, j, k: (i, j)),
            scratch_shapes=[pltpu.VMEM((tm, tn), jnp.float32)],
        ),
        compiler_params=pltpu.CompilerParams(
            dimension_semantics=("parallel", "parallel", "arbitrary")),
        cost_estimate=cost,
    )(x, w_t, packed_params)


if __name__ == "__main__":
    # Small but tiling-exercising shapes (grid (4, 2, 2) with 128-tiles below).
    B, IN, OUT = 512, 256, 256

    key = jax.random.PRNGKey(0)
    kx, kw, kb, kg, kbe, km, kv = jax.random.split(key, 7)

    x = jax.random.normal(kx, (B, IN), dtype=jnp.float32)

    # nn.Linear(IN, OUT) parameters (PyTorch layout: weight is [OUT, IN]).
    bound = 1.0 / (IN ** 0.5)
    w = jax.random.uniform(kw, (OUT, IN), minval=-bound, maxval=bound,
                           dtype=jnp.float32)
    b = jax.random.uniform(kb, (OUT,), minval=-bound, maxval=bound,
                           dtype=jnp.float32)

    # nn.BatchNorm1d(OUT) affine params + running stats (synthetic).
    gamma = 1.0 + 0.1 * jax.random.normal(kg, (OUT,), dtype=jnp.float32)
    beta = 0.1 * jax.random.normal(kbe, (OUT,), dtype=jnp.float32)
    running_mean = 0.1 * jax.random.normal(km, (OUT,), dtype=jnp.float32)
    running_var = 1.0 + 0.1 * jax.random.uniform(kv, (OUT,), dtype=jnp.float32)

    # One-time parameter preparation (hoisted out of the forward path).
    w_t, packed = prepare_ff_block_params(w, b, gamma, beta,
                                          running_mean, running_var)
    w_t = jax.block_until_ready(w_t)
    packed = jax.block_until_ready(packed)

    # Use 128-tiles here so the K-accumulator / multi-block path is exercised.
    out = feedforward_leaky_relu_block(x, w_t, packed, tm=128, tn=128, tk=128)
    out = jax.block_until_ready(out)

    # Pure-JAX f32 reference (eval-mode PyTorch semantics).  Kernel uses bf16
    # MXU inputs with f32 accumulation, so compare with a loosened tolerance.
    y_ref = x @ w.T + b
    y_ref = jnp.where(y_ref >= 0.0, y_ref, 0.01 * y_ref)
    y_ref = (y_ref - running_mean) / jnp.sqrt(running_var + 1e-5) * gamma + beta

    assert out.shape == (B, OUT)
    assert jnp.allclose(out, y_ref, atol=2e-2, rtol=2e-2), float(
        jnp.max(jnp.abs(out - y_ref)))

    print("KERNEL_OK")
</pallas_src>

<mosaic_0001>
module attributes {stable_mosaic.version = 11 : i64} {
  func.func @_ff_leakyrelu_bn_kernel(%arg0: i32, %arg1: i32, %arg2: i32, %arg3: memref<128x128xf32, #tpu.memory_space<vmem>>, %arg4: memref<128x128xbf16, #tpu.memory_space<vmem>>, %arg5: memref<3x128xf32, #tpu.memory_space<vmem>>, %arg6: memref<128x128xf32, #tpu.memory_space<vmem>>, %arg7: memref<128x128xf32, #tpu.memory_space<vmem>>) attributes {dimension_semantics = [#tpu.dimension_semantics<parallel>, #tpu.dimension_semantics<parallel>, #tpu.dimension_semantics<arbitrary>], iteration_bounds = array<i64: 4, 2, 2>, scalar_prefetch = 0 : i64, scratch_operands = 1 : i64, tpu.core_type = #tpu.core_type<tc>, window_params = [{transform_indices = @transform_0, window_bounds = array<i64: 128, 128>}, {transform_indices = @transform_1, window_bounds = array<i64: 128, 128>}, {transform_indices = @transform_2, window_bounds = array<i64: 3, 128>}, {transform_indices = @transform_3, window_bounds = array<i64: 128, 128>}]} {
    %c0_i32 = arith.constant 0 : i32
    %0 = arith.cmpi eq, %arg2, %c0_i32 : i32
    %1 = arith.extui %0 : i1 to i32
    %c0_i32_0 = arith.constant 0 : i32
    %2 = arith.cmpi ne, %1, %c0_i32_0 : i32
    scf.if %2 {
      %cst_9 = arith.constant 0.000000e+00 : f32
      %13 = vector.broadcast %cst_9 : f32 to vector<128x128xf32>
      %c0_10 = arith.constant 0 : index
      %c0_11 = arith.constant 0 : index
      %14 = vector.load %arg7[%c0_10, %c0_11] : memref<128x128xf32, #tpu.memory_space<vmem>>, vector<128x128xf32>
      tpu.vector_store %arg7[%c0_10, %c0_11], %13 {strides = array<i32>} : memref<128x128xf32, #tpu.memory_space<vmem>>, vector<128x128xf32>,
    } else {
    }
    %c0 = arith.constant 0 : index
    %c0_1 = arith.constant 0 : index
    %3 = vector.load %arg3[%c0, %c0_1] : memref<128x128xf32, #tpu.memory_space<vmem>>, vector<128x128xf32>
    %4 = arith.truncf %3 : vector<128x128xf32> to vector<128x128xbf16>
    %c0_2 = arith.constant 0 : index
    %c0_3 = arith.constant 0 : index
    %5 = vector.load %arg7[%c0_2, %c0_3] : memref<128x128xf32, #tpu.memory_space<vmem>>, vector<128x128xf32>
    %c0_4 = arith.constant 0 : index
    %c0_5 = arith.constant 0 : index
    %6 = vector.load %arg4[%c0_4, %c0_5] : memref<128x128xbf16, #tpu.memory_space<vmem>>, vector<128x128xbf16>
    %cst = arith.constant dense<0.000000e+00> : vector<128x128xf32>
    %7 = tpu.matmul %4, %6, %cst {dimension_numbers = #tpu.dot_dimension_numbers<[1], [0], [0], [1], [0, 0, 1, 1], [], []>} : vector<128x128xbf16>, vector<128x128xbf16>, vector<128x128xf32> -> vector<128x128xf32>
    %8 = arith.addf %5, %7 : vector<128x128xf32>
    %c0_6 = arith.constant 0 : index
    %c0_7 = arith.constant 0 : index
    %9 = vector.load %arg7[%c0_6, %c0_7] : memref<128x128xf32, #tpu.memory_space<vmem>>, vector<128x128xf32>
    tpu.vector_store %arg7[%c0_6, %c0_7], %8 {strides = array<i32>} : memref<128x128xf32, #tpu.memory_space<vmem>>, vector<128x128xf32>,
    %c1_i32 = arith.constant 1 : i32
    %10 = arith.cmpi eq, %arg2, %c1_i32 : i32
    %11 = arith.extui %10 : i1 to i32
    %c0_i32_8 = arith.constant 0 : i32
    %12 = arith.cmpi ne, %11, %c0_i32_8 : i32
    scf.if %12 {
      %c0_9 = arith.constant 0 : index
      %c0_10 = arith.constant 0 : index
      %13 = vector.load %arg5[%c0_9, %c0_10] : memref<3x128xf32, #tpu.memory_space<vmem>>, vector<1x128xf32>
      %c1 = arith.constant 1 : index
      %c0_11 = arith.constant 0 : index
      %14 = vector.load %arg5[%c1, %c0_11] : memref<3x128xf32, #tpu.memory_space<vmem>>, vector<1x128xf32>
      %c2 = arith.constant 2 : index
      %c0_12 = arith.constant 0 : index
      %15 = vector.load %arg5[%c2, %c0_12] : memref<3x128xf32, #tpu.memory_space<vmem>>, vector<1x128xf32>
      %c0_13 = arith.constant 0 : index
      %c0_14 = arith.constant 0 : index
      %16 = vector.load %arg7[%c0_13, %c0_14] : memref<128x128xf32, #tpu.memory_space<vmem>>, vector<128x128xf32>
      %17 = vector.broadcast %13 : vector<1x128xf32> to vector<128x128xf32>
      %18 = arith.addf %16, %17 : vector<128x128xf32>
      %cst_15 = arith.constant 0.000000e+00 : f32
      %19 = vector.broadcast %cst_15 : f32 to vector<128x128xf32>
      %20 = arith.cmpf oge, %18, %19 : vector<128x128xf32>
      %cst_16 = arith.constant 0.00999999977 : f32
      %21 = vector.broadcast %cst_16 : f32 to vector<128x128xf32>
      %22 = arith.mulf %21, %18 : vector<128x128xf32>
      %23 = arith.select %20, %18, %22 : vector<128x128xi1>, vector<128x128xf32>
      %24 = vector.broadcast %14 : vector<1x128xf32> to vector<128x128xf32>
      %25 = arith.mulf %23, %24 : vector<128x128xf32>
      %26 = vector.broadcast %15 : vector<1x128xf32> to vector<128x128xf32>
      %27 = arith.addf %25, %26 : vector<128x128xf32>
      %c0_17 = arith.constant 0 : index
      %c0_18 = arith.constant 0 : index
      %28 = vector.load %arg6[%c0_17, %c0_18] : memref<128x128xf32, #tpu.memory_space<vmem>>, vector<128x128xf32>
      tpu.vector_store %arg6[%c0_17, %c0_18], %27 {strides = array<i32>} : memref<128x128xf32, #tpu.memory_space<vmem>>, vector<128x128xf32>,
    } else {
    }
    return
  }
  func.func @transform_0(%arg0: i32, %arg1: i32, %arg2: i32) -> (i32, i32) {
    %c0_i32 = arith.constant 0 : i32
    return %arg0, %arg2 : i32, i32
  }
  func.func @transform_1(%arg0: i32, %arg1: i32, %arg2: i32) -> (i32, i32) {
    %c0_i32 = arith.constant 0 : i32
    return %arg2, %arg1 : i32, i32
  }
  func.func @transform_2(%arg0: i32, %arg1: i32, %arg2: i32) -> (i32, i32) {
    %c0_i32 = arith.constant 0 : i32
    %c0_i32_0 = arith.constant 0 : i32
    return %c0_i32, %arg1 : i32, i32
  }
  func.func @transform_3(%arg0: i32, %arg1: i32, %arg2: i32) -> (i32, i32) {
    %c0_i32 = arith.constant 0 : i32
    return %arg0, %arg1 : i32, i32
  }
}

</mosaic_0001>

<bundles_post_ra>
// kernel: feedforward_leaky_relu_block.1
= control target key start
LH: loop header
LB: loop body
LE: loop exit
PB: predicated region body
PF: predicated region fallthrough
CT: control target
= control target key end

     0   :  { %s2052_s0 = inlined_call_operand.hbm [shape: f32[512,256], index: 0, kind: input, shape index: {}]   ;;  %s2053_s1 = inlined_call_operand.hbm [shape: bf16[256,256], index: 1, kind: input, shape index: {}]   ;;  %s2054_s2 = inlined_call_operand.hbm [shape: f32[3,256], index: 2, kind: input, shape index: {}]   ;;  %s2055_s3 = inlined_call_operand.hbm [shape: f32[512,256], index: 3, kind: output, shape index: {}]  }
   0x1   :  { %2075 = sst [smem:[#allocation28_spill]] %s2052_s0 }
   0x2   :  { %2076 = sst [smem:[#allocation29_spill]] %s2053_s1 }
   0x3   :  { %2077 = sst [smem:[#allocation30_spill]] %s2054_s2 }
   0x4   :  { %2078 = sst [smem:[#allocation31_spill]] %s2055_s3 }
   0x5   :  { %8 = vsyncpa [#allocation4], 0 }
   0x6   :  { %10 = vsyncpa [#allocation4 + $0x1], 0 }
   0x7   :  { %11 = vsyncpa [#allocation7], 0 }
   0x8   :  { %13 = vsyncpa [#allocation7 + $0x1], 0 }
   0x9   :  { %14 = vsyncpa [#allocation5], 0 }
   0xa   :  { %16 = vsyncpa [#allocation5 + $0x1], 0  ;;  %s1468_s12 = smov 0   ;;  %s1470_s13 = smov 0  }
   0xb   :  { %s1472_s14 = smov 0   ;;  %s1474_s15 = smov 0  }
   0xc   :  { %s1476_s16 = smov 0   ;;  %s1478_s17 = smov 0  }
   0xd   :  { %s1480_s18 = smov 0   ;;  %s1482_s19 = smov 0  }
   0xe   :  { %s1484_s20 = smov 0   ;;  %s1486_s21 = smov 0  }
   0xf   :  { %s1488_s22 = smov 0   ;;  %s1490_s23 = smov 0  }
  0x10   :  { %s1492_s24 = smov 0   ;;  %s1494_s25 = smov 0  }
  0x11   :  { %s1496_s26 = smov 0   ;;  %s1498_s27 = smov 0  }
  0x12   :  { %s1500_s28 = smov 0   ;;  %s1502_s29 = smov 0  }
  0x13   :  { %s1504_s30 = smov 0  }
  0x14 LB: > { %2079 = sst [smem:[#allocation14_spill]] %s1361_s12  ;;  %s34_s4 = sadd.s32 1, %s1421_s27  ;;  %s1433_s30 = sphi %s1504_s30, %s22_s30   ;;  %s1429_s29 = sphi %s1502_s29, %s2163_s29   ;;  %s1425_s28 = sphi %s1500_s28, %s2162_s28   ;;  %s1421_s27 = sphi %s1498_s27, %s2161_s27   ;;  %s1417_s26 = sphi %s1496_s26, %s2160_s26   ;;  %s1413_s25 = sphi %s1494_s25, %s2159_s25   ;;  %s1409_s24 = sphi %s1492_s24, %s2158_s24   ;;  %s1405_s23 = sphi %s1490_s23, %s2157_s23   ;;  %s1401_s22 = sphi %s1488_s22, %s2156_s22   ;;  %s1397_s21 = sphi %s1486_s21, %s2155_s21   ;;  %s1393_s20 = sphi %s1484_s20, %s2144_s20   ;;  %s1389_s19 = sphi %s1482_s19, %s2143_s19   ;;  %s1385_s18 = sphi %s1480_s18, %s2154_s18   ;;  %s1381_s17 = sphi %s1478_s17, %s2153_s17   ;;  %s1377_s16 = sphi %s1476_s16, %s2152_s16   ;;  %s1373_s15 = sphi %s1474_s15, %s2141_s15   ;;  %s1369_s14 = sphi %s1472_s14, %s2151_s14   ;;  %s1365_s13 = sphi %s1470_s13, %s2149_s13   ;;  %s1361_s12 = sphi %s1468_s12, %s2147_s12  }
  0x15   : > { %2080 = sst [smem:[#allocation15_spill]] %s1365_s13  ;;  %s37_s5 = sadd.s32 1, %s1425_s28 }
  0x16   : > { %2081 = sst [smem:[#allocation16_spill]] %s1373_s15  ;;  %p35_p0 = scmp.ge.s32.totalorder %s34_s4, 2 }
  0x17   : > { %2082 = sst [smem:[#allocation17_spill]] %s1377_s16  ;;  %p2065_p1 = scmp.eq.s32.totalorder %s1433_s30, 0 }
  0x18   : > { %2083 = sst [smem:[#allocation18_spill]] %s1385_s18  ;;  %s78_s6 = sadd.s32 1, %s1393_s20 }
  0x19   : > { %2084 = sst [smem:[#allocation19_spill]] %s1389_s19  ;;  %p85_p2 = scmp.ne.s32.totalorder %s1393_s20, %s1389_s19 }
  0x1a   : > { %2085 = sst [smem:[#allocation20_spill]] %s1393_s20  ;;  %s2165_s4 = smov (%p35_p0, %s34_s4), 0 }
  0x1b   : > { %2086 = sst [smem:[#allocation21_spill]] %s1409_s24  ;;  %s2167_s5 = smov (!%p35_p0, %s37_s5), %s1425_s28 }
  0x1c   : > { %2087 = sst [smem:[#allocation22_spill]] %s1413_s25  ;;  %s1576_s7 = ssub.s32 %s1421_s27, %s2165_s4 }
  0x1d   : > { %2088 = sst [smem:[#allocation23_spill]] %s1417_s26  ;;  %p1580_p3 = por %p85_p2, %p2065_p1 }
  0x1e   : > { %2089 = sst [smem:[#allocation24_spill]] %s2165_s4  ;;  %p2066_p4 = scmp.ge.s32.totalorder %s2167_s5, 2 }
  0x1f   : > { %p2064_p6 = scmp.lt.s32.totalorder %s1433_s30, 16  ;;  %s192_s10 = sand.u32 1, %s1433_s30  }
  0x20   : > { %s1591_s9 = scalar_select %p2066_p4, 0, %s2167_s5  }
  0x21   : > { %s194_s3 = sand.u32 1, %s1393_s20   ;;  %s890_s26 = sshll.u32 %s1421_s27, 5 }
  0x22   : > { %2091 = sst [smem:[#allocation25_spill]] %s1591_s9  ;;  %s1596_s11 = ssub.s32 %s1425_s28, %s1591_s9 }
  0x23   : > { %s75_s4 = sor.u32 %s1596_s11, %s1576_s7  ;;  %s859_s25 = sshll.u32 %s194_s3, 6 }
  0x24   : > { %p76_p7 = scmp.eq.s32.totalorder %s75_s4, 0  ;;  %s202_s2 = sadd.s32 %s1425_s28, %s890_s26 }
  0x25   : > { %s196_s12 = scalar_lea.vmem [#allocation6], %s859_s25  ;;  %s862_s15 = sshll.u32 %s202_s2, 6 }
  0x26   : > { %s1603_s24 = scalar_select %p76_p7, %s1393_s20, %s78_s6  }
  0x27   : > { %s205_s13 = sshll.u32 %s196_s12, 4  ;;  %s2093_s1 = sld [smem:[#allocation29_spill]]  ;;  %s1606_s13 = int_to_ptr.vmem [resolvable:$true] %s205_s13 }
  0x28   : > { %2092 = sst [smem:[#allocation26_spill]] %s1603_s24  ;;  %p1617_p8 = pnand %p2064_p6, %p1580_p3 }
  0x29   : > { %p865_p9 = scmp.ge.s32.totalorder %s1433_s30, 1  ;;  %s1622_s2 = scalar_lea.sflag [#allocation7], %s192_s10 }
  0x2a   : > { %p1151_p11 = pneg %p1617_p8 }
  0x2d   : > { %s1611_s16 = scalar_lea.hbm %s2093_s1, %s862_s15  ;;  %s1154_s19 = scalar_lea.hbm %s2093_s1, 4096 }
  0x2e   : > { %s1149_s12 = scalar_lea.hbm %s1611_s16, 1024  ;;  %p1155_p0 = scmp.lt.u32.totalorder %s1611_s16, %s2093_s1 }
  0x2f   : > { %p1150_p10 = scmp.ne.s32.totalorder %s1611_s16, %s1149_s12  ;;  %p1156_p2 = scmp.lt.u32.totalorder %s1154_s19, %s1149_s12 }
  0x30   : > { %p1158_p7 = scmp.lt.u32.totalorder %s1149_s12, %s1611_s16 }
  0x31   : > { %p1152_p12 = pnand %p1151_p11, %p1150_p10  ;;  %p1157_p3 = por %p1156_p2, %p1155_p0 }
  0x33   : > { %p1153_p13 = pneg %p1152_p12  ;;  %p1159_p5 = por %p1158_p7, %p1157_p3 }
  0x35   : > { %p1160_p6 = pnand %p1159_p5, %p1153_p13 }
  0x37   : > { %1163 = shalt.err (!%p1160_p6)
}
  0x38   : > { %s1164_s4 = scalar_lea.vmem %s1606_s13, 1024  ;;  %s1435_s6 = smov [#allocation6]  }
  0x39   : > { %p1165_p10 = scmp.ne.s32.totalorder %s1606_s13, %s1164_s4  ;;  %s1169_s8 = sshll.u32 %s1435_s6, 4  ;;  %s1170_s8 = int_to_ptr.vmem [resolvable:$false] %s1169_s8 }
  0x3a   : > { %s1171_s10 = scalar_lea.vmem %s1170_s8, 2048  ;;  %p1172_p4 = scmp.lt.s32.totalorder %s1606_s13, %s1170_s8 }
  0x3b   : > { %p1167_p12 = pnand %p1165_p10, %p1151_p11  ;;  %p1173_p0 = scmp.lt.s32.totalorder %s1171_s10, %s1164_s4 }
  0x3d   : > { %p1168_p1 = pneg %p1167_p12  ;;  %p1174_p2 = por %p1173_p0, %p1172_p4 }
  0x3f   : > { %p1175_p3 = pnand %p1174_p2, %p1168_p1 }
  0x41   : > { %1178 = shalt.err (!%p1175_p3)
}
  0x42   : > { %s2067_s12 = smov 128   ;;  %s1437_s15 = smov 64  }
  0x43   : > { %s1438_s18 = smov 4   ;;  %p231_p1 = scmp.lt.s32.totalorder %s1433_s30, 17 }
  0x44   : > { %970 = dma.hbm_to_vmem [thread:$0]  (!%p1617_p8), %s1611_s16, 1024, %s1606_s13, %s1622_s2, %s2067_s12, %s1437_s15, %s1438_s18  }
  0x45   : > { %p1654_p4 = pnand %p865_p9, %p231_p1  ;;  %s41_s25 = sadd.s32 1, %s1429_s29 }
  0x46   : > { %s50_s26 = sadd.s32 1, %s1405_s23  ;;  %p2096_p5 = scmp.ge.s32.totalorder %s2167_s5, 2 }
  0x47   : > { %s2095_s19 = scalar_select %p1654_p4, 1, 0 }
  0x48   : > { %s2169_s25 = smov (!%p2096_p5, %s41_s25), %s1429_s29  ;;  %p57_p6 = scmp.ne.s32.totalorder %s1405_s23, %s1401_s22 }
  0x49   : > { %p43_p13 = scmp.ge.s32.totalorder %s2169_s25, 4  ;;  %s132_s3 = sadd.s32 1, %s1369_s14 }
  0x4a   : > { %p2097_p8 = scmp.eq.s32.totalorder %s1433_s30, 0  ;;  %s169_s16 = sand.u32 1, %s1405_s23  }
  0x4b   : > { %s2171_s25 = smov (%p43_p13, %s2169_s25), 0  ;;  %s855_s5 = sshll.u32 %s169_s16, 7 }
  0x4c   : > { %p1670_p7 = por %p2097_p8, %p57_p6  ;;  %2099 = sst [smem:[#allocation27_spill]] %s2171_s25 }
  0x4d   : > { %s45_s4 = ssub.s32 %s1429_s29, %s2171_s25  ;;  %s889_s10 = sshll.u32 %s1429_s29, 5 }
  0x4e   : > { %s47_s6 = sor.u32 %s1576_s7, %s45_s4  ;;  %s129_s8 = sor.u32 %s1596_s11, %s45_s4 }
  0x4f   : > { %p48_p9 = scmp.eq.s32.totalorder %s47_s6, 0  ;;  %p130_p10 = scmp.eq.s32.totalorder %s129_s8, 0 }
  0x50   : > { %s173_s15 = scalar_lea.vmem [#allocation3], %s855_s5  ;;  %s179_s9 = sadd.s32 %s1421_s27, %s889_s10 }
  0x51   : > { %s182_s18 = sshll.u32 %s173_s15, 4  ;;  %s858_s24 = sshll.u32 %s179_s9, 7  ;;  %s1689_s18 = int_to_ptr.vmem [resolvable:$true] %s182_s18 }
  0x52   : > { %s1683_s12 = scalar_select %p48_p9, %s1405_s23, %s50_s26  }
  0x53   : > { %s1686_s1 = scalar_select %p130_p10, %s1369_s14, %s132_s3  }
  0x54   : > { %p2100_p12 = scmp.lt.s32.totalorder %s1433_s30, 16  ;;  %s2102_s0 = sld [smem:[#allocation28_spill]] }
  0x55   : > { %s1704_s26 = scalar_lea.sflag [#allocation4], %s169_s16 }
  0x56   : > { %p1695_p0 = pnand %p2100_p12, %p1670_p7 }
  0x58   : > { %p1181_p3 = pneg %p1695_p0 }
  0x5a   : > { %s1702_s5 = scalar_lea.hbm %s2102_s0, %s858_s24  ;;  %s1184_s6 = scalar_lea.hbm %s2102_s0, 16384 }
  0x5b   : > { %s1179_s9 = scalar_lea.hbm %s1702_s5, 2048  ;;  %p1185_p6 = scmp.lt.u32.totalorder %s1702_s5, %s2102_s0 }
  0x5c   : > { %p1180_p2 = scmp.ne.s32.totalorder %s1702_s5, %s1179_s9  ;;  %p1186_p13 = scmp.lt.u32.totalorder %s1184_s6, %s1179_s9 }
  0x5d   : > { %p1188_p7 = scmp.lt.u32.totalorder %s1179_s9, %s1702_s5 }
  0x5e   : > { %p1182_p1 = pnand %p1181_p3, %p1180_p2  ;;  %p1187_p8 = por %p1186_p13, %p1185_p6 }
  0x60   : > { %p1183_p5 = pneg %p1182_p1  ;;  %p1189_p9 = por %p1188_p7, %p1187_p8 }
  0x62   : > { %p1190_p10 = pnand %p1189_p9, %p1183_p5 }
  0x64   : > { %1193 = shalt.err (!%p1190_p10)
}
  0x65   : > { %s1194_s16 = scalar_lea.vmem %s1689_s18, 2048  ;;  %s1439_s10 = smov [#allocation3]  }
  0x66   : > { %p1195_p12 = scmp.ne.s32.totalorder %s1689_s18, %s1194_s16  ;;  %s1199_s15 = sshll.u32 %s1439_s10, 4  ;;  %s1200_s15 = int_to_ptr.vmem [resolvable:$false] %s1199_s15 }
  0x67   : > { %s1201_s7 = scalar_lea.vmem %s1200_s15, 4096  ;;  %p1202_p11 = scmp.lt.s32.totalorder %s1689_s18, %s1200_s15 }
  0x68   : > { %p1197_p2 = pnand %p1195_p12, %p1181_p3  ;;  %p1203_p6 = scmp.lt.s32.totalorder %s1201_s7, %s1194_s16 }
  0x6a   : > { %p1198_p1 = pneg %p1197_p2  ;;  %p1204_p13 = por %p1203_p6, %p1202_p11 }
  0x6c   : > { %p1205_p8 = pnand %p1204_p13, %p1198_p1 }
  0x6e   : > { %1208 = shalt.err (!%p1205_p8)
}
  0x6f   : > { %s1440_s4 = smov 256   ;;  %s2103_s9 = sld [smem:[#allocation17_spill]] }
  0x70   : > { %s2104_s3 = sld [smem:[#allocation19_spill]]  ;;  %s2106_s6 = sld [smem:[#allocation16_spill]] }
  0x71   : > { %s2105_s13 = sld [smem:[#allocation18_spill]]  ;;  %s2107_s24 = sld [smem:[#allocation15_spill]] }
  0x72   : > { %s1441_s8 = smov 8   ;;  %s2108_s16 = smov 128  }
  0x73   : > { %s2109_s10 = sld [smem:[#allocation14_spill]]  ;;  %s1734_s15 = sadd.s32 4294967295, %s1433_s30  }
  0x74   : > { %967 = dma.hbm_to_vmem [thread:$0]  (!%p1695_p0), %s1702_s5, 2048, %s1689_s18, %s1704_s26, %s1440_s4, %s2108_s16, %s1441_s8  }
  0x75   : > { %s852_s7 = sadd.s32 4294967294, %s1433_s30   ;;  %p64_p11 = scmp.eq.s32.totalorder %s1734_s15, 0 }
  0x76   : > { %p102_p3 = scmp.eq.s32.totalorder %s1596_s11, 0  ;;  %s104_s0 = sadd.s32 1, %s1381_s17 }
  0x77   : > { %p111_p5 = scmp.ne.s32.totalorder %s1381_s17, %s2103_s9  ;;  %p2110_p7 = scmp.ne.s32.totalorder %s1401_s22, %s1397_s21 }
  0x78   : > { %p2112_p10 = scmp.ne.s32.totalorder %s2104_s3, %s2105_s13  ;;  %p2114_p0 = scmp.eq.s32.totalorder %s1433_s30, 0 }
  0x79   : > { %p1745_p9 = por %p64_p11, %p2110_p7  ;;  %p117_p1 = scmp.ne.s32.totalorder %s2103_s9, %s2106_s6 }
  0x7a   : > { %p1752_p12 = por %p2112_p10, %p64_p11  ;;  %p1761_p2 = por %p111_p5, %p2114_p0 }
  0x7b   : > { %s2111_s25 = scalar_select %p1745_p9, 1, 0 }
  0x7c   : > { %s2113_s20 = scalar_select %p1752_p12, 1, 0 }
  0x7d   : > { %s1757_s18 = scalar_select %p102_p3, %s1381_s17, %s104_s0  }
  0x7e   : > { %p142_p6 = scmp.ne.s32.totalorder %s1369_s14, %s2107_s24  ;;  %p143_p13 = scmp.eq.s32.totalorder %s1734_s15, 15 }
  0x7f   : > { %p1770_p8 = por %p117_p1, %p64_p11  ;;  %p148_p7 = scmp.ne.s32.totalorder %s2107_s24, %s2109_s10 }
  0x80   : > { %p1776_p10 = por %p143_p13, %p142_p6  ;;  %p149_p3 = scmp.eq.s32.totalorder %s852_s7, 15 }
  0x81   : > { %s2116_s21 = scalar_select %p1770_p8, 1, 0 }
  0x82   : > { %s2117_s11 = scalar_select %p1776_p10, 1, 0 }
  0x83   : > { %s217_s0 = sand.u32 1, %s1381_s17   ;;  %s864_s26 = sshll.u32 %s1425_s28, 6 }
  0x84   : > { %p1782_p5 = por %p149_p3, %p148_p7  ;;  %s863_s3 = sshll.u32 %s217_s0, 2 }
  0x85   : > { %s2119_s6 = sld [smem:[#allocation30_spill]]  ;;  %s219_s24 = scalar_lea.vmem [#allocation8], %s863_s3 }
  0x86   : > { %s2118_s4 = scalar_select %p1782_p5, 1, 0 }
  0x87   : > { %s226_s16 = sshll.u32 %s219_s24, 4  ;;  %p2120_p11 = scmp.lt.s32.totalorder %s1433_s30, 16  ;;  %s227_s16 = int_to_ptr.vmem [resolvable:$true] %s226_s16 }
  0x89   : > { %p1795_p0 = pnand %p2120_p11, %p1761_p2 }
  0x8b   : > { %s1789_s8 = scalar_lea.hbm %s2119_s6, %s864_s26  ;;  %p1211_p6 = pneg %p1795_p0 }
  0x8c   : > { %s1209_s7 = scalar_lea.hbm %s1789_s8, 64  ;;  %s1214_s5 = scalar_lea.hbm %s2119_s6, 128 }
  0x8d   : > { %p1210_p1 = scmp.ne.s32.totalorder %s1789_s8, %s1209_s7  ;;  %p1215_p2 = scmp.lt.u32.totalorder %s1789_s8, %s2119_s6 }
  0x8e   : > { %p1216_p3 = scmp.lt.u32.totalorder %s1214_s5, %s1209_s7  ;;  %p1218_p5 = scmp.lt.u32.totalorder %s1209_s7, %s1789_s8 }
  0x8f   : > { %p1212_p13 = pnand %p1211_p6, %p1210_p1 }
  0x90   : > { %p1217_p11 = por %p1216_p3, %p1215_p2 }
  0x91   : > { %p1213_p7 = pneg %p1212_p13 }
  0x92   : > { %p1219_p10 = por %p1218_p5, %p1217_p11 }
  0x94   : > { %p1220_p8 = pnand %p1219_p10, %p1213_p7 }
  0x96   : > { %1223 = shalt.err (!%p1220_p8)
}
  0x97   : > { %s1224_s13 = scalar_lea.vmem %s227_s16, 64  ;;  %s1442_s24 = smov [#allocation8]  }
  0x98   : > { %p1225_p12 = scmp.ne.s32.totalorder %s227_s16, %s1224_s13  ;;  %s1229_s0 = sshll.u32 %s1442_s24, 4  ;;  %s1230_s0 = int_to_ptr.vmem [resolvable:$false] %s1229_s0 }
  0x99   : > { %s1231_s26 = scalar_lea.vmem %s1230_s0, 128  ;;  %p1232_p9 = scmp.lt.s32.totalorder %s227_s16, %s1230_s0 }
  0x9a   : > { %p1227_p1 = pnand %p1225_p12, %p1211_p6  ;;  %p1233_p4 = scmp.lt.s32.totalorder %s1231_s26, %s1224_s13 }
  0x9c   : > { %p1228_p13 = pneg %p1227_p1  ;;  %p1234_p2 = por %p1233_p4, %p1232_p9 }
  0x9e   : > { %p1235_p3 = pnand %p1234_p2, %p1228_p13 }
  0xa0   : > { %1238 = shalt.err (!%p1235_p3)
}
  0xa1   : > { %973 = dma.hbm_to_vmem [thread:$0]  (!%p1795_p0), %s1789_s8, 64, %s227_s16, %s1622_s2  }
  0xa2   : > { %p2122_p8 = scmp.ne.s32.totalorder %s2095_s19, 0 }
  0xa3   : > { %s237_s7 = sand.u32 (!%p2122_p8), 1, %s1401_s22   ;;  %p2123_p12 = scmp.ne.s32.totalorder (!%p2122_p8), %s2111_s25, 0 }
  0xa4   : > { %235 = sbr.rel (%p2122_p8) target bundleno = 525 (0x20d), region = 32  ;;  %s866_s5 = sshll.u32 (!%p2122_p8), %s237_s7, 7 }
  0xa5   : > { %s238_s3 = scalar_lea.sflag (!%p2122_p8), [#allocation4], %s237_s7  ;;  %s1824_s9 = scalar_lea.vmem (!%p2122_p8), [#allocation3], %s866_s5 }
  0xab   : > { %1344 = dma.done.wait (%p2123_p12), %s238_s3, 2048  }
  0xac   : > { %1346 = vsyncadd (%p2123_p12), %s238_s3, 4294965248  ;;  %s2124_s10 = sld [smem:[#allocation19_spill]]  ;;  %s246_s13 = sand.u32 1, %s1734_s15  }
  0xad   : > { %s247_s19 = scalar_lea.sflag [#allocation7], %s246_s13  ;;  %p2125_p4 = scmp.ne.s32.totalorder %s2113_s20, 0 }
  0xb2   : > { %s248_s2 = sand.u32 1, %s2124_s10  }
  0xb3   : > { %s867_s8 = sshll.u32 %s248_s2, 6 }
  0xb4   : > { %s1832_s16 = scalar_lea.vmem [#allocation6], %s867_s8 }
  0xb5   : > { %1348 = dma.done.wait (%p2125_p4), %s247_s19, 1024  }
  0xb6   : > { %1350 = vsyncadd (%p2125_p4), %s247_s19, 4294966272  ;;  %s2126_s24 = sld [smem:[#allocation17_spill]]  ;;  %p2127_p9 = scmp.ne.s32.totalorder %s2116_s21, 0 }
  0xbc   : > { %s257_s0 = sand.u32 1, %s2126_s24  }
  0xbd   : > { %s868_s26 = sshll.u32 %s257_s0, 2 }
  0xbe   : > { %s1839_s25 = scalar_lea.vmem [#allocation8], %s868_s26 }
  0xbf   : > { %1352 = dma.done.wait (%p2127_p9), %s247_s19, 64  }
  0xc0   : > { %1354 = vsyncadd (%p2127_p9), %s247_s19, 4294967232  ;;  %s2128_s15 = sld [smem:[#allocation15_spill]]  ;;  %s2129_s20 = sld [smem:[#allocation21_spill]] }
  0xc6   : > { %s289_s7 = sand.u32 1, %s2128_s15   ;;  %p870_p10 = scmp.ne.s32.totalorder %s2129_s20, 0 }
  0xc7   : > { %s869_s5 = sshll.u32 %s289_s7, 7  ;;  %v1443_v0 = vmov (!%p870_p10), 0.0  }
  0xc8   : > { %s1848_s3 = scalar_lea.vmem [#allocation9], %s869_s5  ;;  %299 = sbr.rel (%p870_p10) target bundleno = 208 (0xd0), region = 48  ;;  %300 = vst [vmem:[#allocation2] sm:$0xff] (!%p870_p10), %v1443_v0  ;;  %301 = vst [vmem:[#allocation2 + $0x8] sm:$0xff] (!%p870_p10), %v1443_v0 }
  0xc9   : > { %302 = vst [vmem:[#allocation2 + $0x10] sm:$0xff] (!%p870_p10), %v1443_v0  ;;  %303 = vst [vmem:[#allocation2 + $0x18] sm:$0xff] (!%p870_p10), %v1443_v0 }
  0xca   : > { %304 = vst [vmem:[#allocation2 + $0x20] sm:$0xff] (!%p870_p10), %v1443_v0  ;;  %305 = vst [vmem:[#allocation2 + $0x28] sm:$0xff] (!%p870_p10), %v1443_v0 }
  0xcb   : > { %306 = vst [vmem:[#allocation2 + $0x30] sm:$0xff] (!%p870_p10), %v1443_v0  ;;  %307 = vst [vmem:[#allocation2 + $0x38] sm:$0xff] (!%p870_p10), %v1443_v0 }
  0xcc   : > { %308 = vst [vmem:[#allocation2 + $0x40] sm:$0xff] (!%p870_p10), %v1443_v0  ;;  %309 = vst [vmem:[#allocation2 + $0x48] sm:$0xff] (!%p870_p10), %v1443_v0 }
  0xcd   : > { %310 = vst [vmem:[#allocation2 + $0x50] sm:$0xff] (!%p870_p10), %v1443_v0  ;;  %311 = vst [vmem:[#allocation2 + $0x58] sm:$0xff] (!%p870_p10), %v1443_v0 }
  0xce   : > { %312 = vst [vmem:[#allocation2 + $0x60] sm:$0xff] (!%p870_p10), %v1443_v0  ;;  %313 = vst [vmem:[#allocation2 + $0x68] sm:$0xff] (!%p870_p10), %v1443_v0 }
  0xcf   : > { %314 = vst [vmem:[#allocation2 + $0x70] sm:$0xff] %v1443_v0  ;;  %315 = vst [vmem:[#allocation2 + $0x78] sm:$0xff] %v1443_v0 }
  0xd0 PF: > { %v1141_v1 = vld [vmem:[%s1832_s16] sm:$0xff]   ;;  %v1142_v2 = vld [vmem:[%s1832_s16 + $0x8] sm:$0xff]   ;;  %v1143_v3 = vld [vmem:[%s1832_s16 + $0x10] sm:$0xff]   ;;  %s2130_s21 = sld [smem:[#allocation21_spill]] }
  0xd1   : > { %908 = vmatprep.subr.bf16.mxu0 %v1141_v1  ;;  %940 = vmatprep.subr.bf16.mxu1 %v1141_v1  ;;  %v1144_v4 = vld [vmem:[%s1832_s16 + $0x18] sm:$0xff]   ;;  %v316_v5 = vld [vmem:[%s1824_s9] sm:$0xff]  ;;  %v317_v6 = vld [vmem:[%s1824_s9 + $0x8] sm:$0xff] }
  0xd2   : > { %909 = vmatpush3.bf16.msra.mxu0 %v1141_v1  ;;  %948 = vmatpush3.bf16.msra.mxu1 %v1141_v1  ;;  %v324_v7 = vld [vmem:[%s1824_s9 + $0x40] sm:$0xff]  ;;  %v332_v8 = vpack.c.bf16 %v317_v6, %v316_v5  ;;  %v325_v9 = vld [vmem:[%s1824_s9 + $0x48] sm:$0xff]  ;;  %v1147_v13 = vld [vmem:[%s1832_s16 + $0x30] sm:$0xff]  }
  0xd3   : > { %910 = vmatprep.subr.bf16.mxu0 %v1142_v2  ;;  %941 = vmatprep.subr.bf16.mxu1 %v1142_v2  ;;  %v336_v10 = vpack.c.bf16 %v325_v9, %v324_v7  ;;  %v1145_v11 = vld [vmem:[%s1832_s16 + $0x20] sm:$0xff]   ;;  %v1146_v12 = vld [vmem:[%s1832_s16 + $0x28] sm:$0xff]   ;;  %v1148_v14 = vld [vmem:[%s1832_s16 + $0x38] sm:$0xff]  }
  0xd4   : > { %924 = vmatprep.mubr.bf16.mxu0 %v332_v8  ;;  %v318_v15 = vld [vmem:[%s1824_s9 + $0x10] sm:$0xff]  ;;  %v319_v16 = vld [vmem:[%s1824_s9 + $0x18] sm:$0xff]  ;;  %v320_v19 = vld [vmem:[%s1824_s9 + $0x20] sm:$0xff] }
  0xd5   : > { %932 = vmatprep.mubr.bf16.mxu1 %v336_v10  ;;  %v326_v17 = vld [vmem:[%s1824_s9 + $0x50] sm:$0xff]  ;;  %v327_v18 = vld [vmem:[%s1824_s9 + $0x58] sm:$0xff]  ;;  %v321_v20 = vld [vmem:[%s1824_s9 + $0x28] sm:$0xff]  ;;  %v333_v23 = vpack.c.bf16 %v319_v16, %v318_v15 }
  0xd6   : > { %911 = vmatpush3.bf16.msra.mxu0 %v1142_v2  ;;  %949 = vmatpush3.bf16.msra.mxu1 %v1142_v2  ;;  %v328_v21 = vld [vmem:[%s1824_s9 + $0x60] sm:$0xff]  ;;  %v329_v22 = vld [vmem:[%s1824_s9 + $0x68] sm:$0xff]  ;;  %v337_v24 = vpack.c.bf16 %v327_v18, %v326_v17  ;;  %v334_v25 = vpack.c.bf16 %v321_v20, %v320_v19  ;;  %v322_v27 = vld [vmem:[%s1824_s9 + $0x30] sm:$0xff]  ;;  %p879_p5 = scmp.ne.s32.totalorder %s2130_s21, 1 }
  0xd7   : > { %912 = vmatprep.subr.bf16.mxu0 %v1143_v3  ;;  %942 = vmatprep.subr.bf16.mxu1 %v1143_v3  ;;  %v338_v26 = vpack.c.bf16 %v329_v22, %v328_v21  ;;  %v323_v28 = vld [vmem:[%s1824_s9 + $0x38] sm:$0xff]  ;;  %v330_v29 = vld [vmem:[%s1824_s9 + $0x70] sm:$0xff]  ;;  %v340_v35 = vld [vmem:[#allocation2] sm:$0xff] }
  0xd8   : > { %v331_v30 = vld [vmem:[%s1824_s9 + $0x78] sm:$0xff]  ;;  %v335_v31 = vpack.c.bf16 %v323_v28, %v322_v27  ;;  %v342_v33 = vld [vmem:[#allocation2 + $0x10] sm:$0xff]  ;;  %v348_v36 = vld [vmem:[#allocation2 + $0x40] sm:$0xff] }
  0xd9   : > { %v339_v32 = vpack.c.bf16 %v331_v30, %v330_v29  ;;  %v350_v34 = vld [vmem:[#allocation2 + $0x50] sm:$0xff]  ;;  %v343_v39 = vld [vmem:[#allocation2 + $0x18] sm:$0xff]  ;;  %v341_v45 = vld [vmem:[#allocation2 + $0x8] sm:$0xff] }
  0xda   : > { %913 = vmatpush3.bf16.msra.mxu0 %v1143_v3  ;;  %950 = vmatpush3.bf16.msra.mxu1 %v1143_v3  ;;  %v351_v40 = vld [vmem:[#allocation2 + $0x58] sm:$0xff]  ;;  %v349_v46 = vld [vmem:[#allocation2 + $0x48] sm:$0xff]  ;;  %v346_v57 = vld [vmem:[#allocation2 + $0x30] sm:$0xff] }
  0xdb   : > { %914 = vmatprep.subr.bf16.mxu0 %v1144_v4  ;;  %943 = vmatprep.subr.bf16.mxu1 %v1144_v4  ;;  %v354_v58 = vld [vmem:[#allocation2 + $0x70] sm:$0xff]  ;;  %v344_v59 = vld [vmem:[#allocation2 + $0x20] sm:$0xff]  ;;  %v347_v63 = vld [vmem:[#allocation2 + $0x38] sm:$0xff] }
  0xdc   : > { %v352_v60 = vld [vmem:[#allocation2 + $0x60] sm:$0xff]  ;;  %v355_v0 = vld [vmem:[#allocation2 + $0x78] sm:$0xff]  ;;  %v345_v5 = vld [vmem:[#allocation2 + $0x28] sm:$0xff] }
  0xdd   : > { %v353_v6 = vld [vmem:[#allocation2 + $0x68] sm:$0xff]  ;;  %v1877_v17 = vld [vmem:[%s1839_s25] ss:$0 sm:$0xff] (!%p879_p5)  ;;  %v1883_v27 = vld [vmem:[%s1839_s25 + $0x1] ss:$0 sm:$0xff] (!%p879_p5) }
  0xde   : > { %915 = vmatpush3.bf16.msra.mxu0 %v1144_v4  ;;  %951 = vmatpush3.bf16.msra.mxu1 %v1144_v4 }
  0xdf   : > { %916 = vmatprep.subr.bf16.mxu0 %v1145_v11  ;;  %944 = vmatprep.subr.bf16.mxu1 %v1145_v11 }
  0xe2   : > { %917 = vmatpush3.bf16.msra.mxu0 %v1145_v11  ;;  %952 = vmatpush3.bf16.msra.mxu1 %v1145_v11 }
  0xe3   : > { %918 = vmatprep.subr.bf16.mxu0 %v1146_v12  ;;  %945 = vmatprep.subr.bf16.mxu1 %v1146_v12 }
  0xe6   : > { %919 = vmatpush3.bf16.msra.mxu0 %v1146_v12  ;;  %953 = vmatpush3.bf16.msra.mxu1 %v1146_v12 }
  0xe7   : > { %920 = vmatprep.subr.bf16.mxu0 %v1147_v13  ;;  %946 = vmatprep.subr.bf16.mxu1 %v1147_v13 }
  0xea   : > { %921 = vmatpush3.bf16.msra.mxu0 %v1147_v13  ;;  %954 = vmatpush3.bf16.msra.mxu1 %v1147_v13 }
  0xeb   : > { %922 = vmatprep.subr.bf16.mxu0 %v1148_v14  ;;  %947 = vmatprep.subr.bf16.mxu1 %v1148_v14 }
  0xee   : > { %923 = vmatpush3.bf16.msra.mxu0 %v1148_v14  ;;  %955 = vmatpush3.bf16.msra.mxu1 %v1148_v14 }
  0xf1   : > { %925 = vmatmul.mubr.bf16.vlgmr.msra.gmra.mrb[0].mxu0 %v333_v23  ;;  %933 = vmatmul.mubr.bf16.vlgmr.msra.gmra.mrb[0].mxu1 %v337_v24 }
  0xf2   : > { %928 = vmatprep.mubr.bf16.mxu0 %v334_v25  ;;  %936 = vmatprep.mubr.bf16.mxu1 %v338_v26 }
  0xf9   : > { %929 = vmatmul.mubr.bf16.gmra.mrb[4].mxu0 %v335_v31  ;;  %937 = vmatmul.mubr.bf16.gmra.mrb[4].mxu1 %v339_v32 }
 0x1c4   : > { %v926_v37 = vpop.f32.mrb[0].mxu0  ;;  %v934_v38 = vpop.f32.mrb[0].mxu1 }
 0x1c5   : > { %v519_v41 = vadd.f32 %v926_v37, %v342_v33  ;;  %v527_v42 = vadd.f32 %v934_v38, %v350_v34  ;;  %v454_v43 = vpop.f32.mrb[1].mxu0  ;;  %v486_v44 = vpop.f32.mrb[1].mxu1 }
 0x1c6   : > { %v517_v47 = vadd.f32 %v454_v43, %v340_v35  ;;  %v525_v48 = vadd.f32 %v486_v44, %v348_v36  ;;  %v927_v49 = vpop.f32.mrb[2].mxu0  ;;  %v935_v50 = vpop.f32.mrb[2].mxu1  ;;  %v1889_v35 = vld [vmem:[%s1839_s25 + $0x2] ss:$0 sm:$0xff] (!%p879_p5) }
 0x1c7   : > { %535 = vst [vmem:[#allocation2 + $0x10] sm:$0xff] %v519_v41  ;;  %543 = vst [vmem:[#allocation2 + $0x50] sm:$0xff] %v527_v42  ;;  %v520_v51 = vadd.f32 %v927_v49, %v343_v39  ;;  %v528_v52 = vadd.f32 %v935_v50, %v351_v40  ;;  %v457_v53 = vpop.f32.mrb[3].mxu0  ;;  %v489_v54 = vpop.f32.mrb[3].mxu1 }
 0x1c8   : > { %533 = vst [vmem:[#allocation2] sm:$0xff] %v517_v47  ;;  %541 = vst [vmem:[#allocation2 + $0x40] sm:$0xff] %v525_v48  ;;  %v518_v55 = vadd.f32 %v457_v53, %v341_v45  ;;  %v526_v56 = vadd.f32 %v489_v54, %v349_v46 }
 0x1c9   : > { %536 = vst [vmem:[#allocation2 + $0x18] sm:$0xff] %v520_v51  ;;  %544 = vst [vmem:[#allocation2 + $0x58] sm:$0xff] %v528_v52 }
 0x1ca   : > { %534 = vst [vmem:[#allocation2 + $0x8] sm:$0xff] %v518_v55  ;;  %542 = vst [vmem:[#allocation2 + $0x48] sm:$0xff] %v526_v56 }
 0x1cc   : > { %v930_v61 = vpop.f32.mrb[4].mxu0  ;;  %v938_v62 = vpop.f32.mrb[4].mxu1  ;;  %552 = sbr.rel (%p879_p5) target bundleno = 494 (0x1ee), region = 52 }
 0x1cd   : > { %v523_v1 = vadd.f32 %v930_v61, %v346_v57  ;;  %v531_v2 = vadd.f32 %v938_v62, %v354_v58  ;;  %v470_v3 = vpop.f32.mrb[5].mxu0  ;;  %v502_v4 = vpop.f32.mrb[5].mxu1 }
 0x1ce   : > { %v521_v7 = vadd.f32 %v470_v3, %v344_v59  ;;  %v529_v8 = vadd.f32 %v502_v4, %v352_v60  ;;  %v931_v9 = vpop.f32.mrb[6].mxu0  ;;  %v939_v10 = vpop.f32.mrb[6].mxu1  ;;  %v558_v20 = vld [vmem:[#allocation2 + $0x10] sm:$0xff] (!%p879_p5) }
 0x1cf   : > { %539 = vst [vmem:[#allocation2 + $0x30] sm:$0xff] %v523_v1  ;;  %547 = vst [vmem:[#allocation2 + $0x70] sm:$0xff] %v531_v2  ;;  %v524_v11 = vadd.f32 %v931_v9, %v347_v63  ;;  %v532_v12 = vadd.f32 %v939_v10, %v355_v0  ;;  %v473_v13 = vpop.f32.mrb[7].mxu0  ;;  %v505_v14 = vpop.f32.mrb[7].mxu1  ;;  %v556_v18 = vld [vmem:[#allocation2] sm:$0xff] (!%p879_p5)  ;;  %v578_v23 = vadd.f32 (!%p879_p5), %v1877_v17, %v558_v20  ;;  %v566_v62 = vld [vmem:[#allocation2 + $0x50] sm:$0xff] (!%p879_p5) }
 0x1d0   : > { %537 = vst [vmem:[#allocation2 + $0x20] sm:$0xff] %v521_v7  ;;  %545 = vst [vmem:[#allocation2 + $0x60] sm:$0xff] %v529_v8  ;;  %v522_v15 = vadd.f32 %v473_v13, %v345_v5  ;;  %v530_v16 = vadd.f32 %v505_v14, %v353_v6  ;;  %v576_v21 = vadd.f32 (!%p879_p5), %v1877_v17, %v556_v18  ;;  %v559_v24 = vld [vmem:[#allocation2 + $0x18] sm:$0xff] (!%p879_p5)  ;;  %v564_v48 = vld [vmem:[#allocation2 + $0x40] sm:$0xff] (!%p879_p5) }
 0x1d1   : > { %540 = vst [vmem:[#allocation2 + $0x38] sm:$0xff] %v524_v11  ;;  %548 = vst [vmem:[#allocation2 + $0x78] sm:$0xff] %v532_v12  ;;  %v557_v19 = vld [vmem:[#allocation2 + $0x8] sm:$0xff] (!%p879_p5)  ;;  %v579_v28 = vadd.f32 (!%p879_p5), %v1877_v17, %v559_v24  ;;  %vm594_vm2 = vcmp.ge.f32.partialorder (!%p879_p5), %v578_v23, 0.0  ;;  %v610_v33 = vmul.f32 (!%p879_p5), 0.01, %v578_v23  ;;  %v584_v60 = vadd.f32 (!%p879_p5), %v1877_v17, %v564_v48 }
 0x1d2   : > { %538 = vst [vmem:[#allocation2 + $0x28] sm:$0xff] %v522_v15  ;;  %546 = vst [vmem:[#allocation2 + $0x68] sm:$0xff] %v530_v16  ;;  %v577_v22 = vadd.f32 (!%p879_p5), %v1877_v17, %v557_v19  ;;  %vm592_vm0 = vcmp.ge.f32.partialorder (!%p879_p5), %v576_v21, 0.0  ;;  %v608_v31 = vmul.f32 (!%p879_p5), 0.01, %v576_v21  ;;  %v565_v49 = vld [vmem:[#allocation2 + $0x48] sm:$0xff] (!%p879_p5)  ;;  %v586_v7 = vadd.f32 (!%p879_p5), %v1877_v17, %v566_v62 }
 0x1d3   : > { %vm595_vm3 = vcmp.ge.f32.partialorder %v579_v28, 0.0  ;;  %v611_v34 = vmul.f32 0.01, %v579_v28  ;;  %v626_v41 = vsel %vm594_vm2, %v578_v23, %v610_v33  ;;  %v585_v61 = vadd.f32 %v1877_v17, %v565_v49  ;;  %v567_v1 = vld [vmem:[#allocation2 + $0x58] sm:$0xff] }
 0x1d4   : > { %vm593_vm1 = vcmp.ge.f32.partialorder %v577_v22, 0.0  ;;  %v609_v32 = vmul.f32 0.01, %v577_v22  ;;  %v624_v36 = vsel %vm592_vm0, %v576_v21, %v608_v31  ;;  %v646_v45 = vmul.f32 %v1883_v27, %v626_v41 }
 0x1d5   : > { %v644_v39 = vmul.f32 %v1883_v27, %v624_v36  ;;  %v627_v42 = vsel %vm595_vm3, %v579_v28, %v611_v34  ;;  %vm600_vm8 = vcmp.ge.f32.partialorder %v584_v60, 0.0  ;;  %v616_v3 = vmul.f32 0.01, %v584_v60 }
 0x1d6   : > { %v625_v37 = vsel %vm593_vm1, %v577_v22, %v609_v32  ;;  %v562_v43 = vld [vmem:[#allocation2 + $0x30] sm:$0xff]  ;;  %v647_v46 = vmul.f32 %v1883_v27, %v627_v42  ;;  %v666_v54 = vadd.f32 %v1889_v35, %v646_v45  ;;  %vm601_vm9 = vcmp.ge.f32.partialorder %v585_v61, 0.0 }
 0x1d7   : > { %v560_v25 = vld [vmem:[#allocation2 + $0x20] sm:$0xff]  ;;  %v645_v40 = vmul.f32 %v1883_v27, %v625_v37  ;;  %v664_v50 = vadd.f32 %v1889_v35, %v644_v39  ;;  %v582_v56 = vadd.f32 %v1877_v17, %v562_v43  ;;  %v617_v6 = vmul.f32 0.01, %v585_v61  ;;  %v570_v18 = vld [vmem:[#allocation2 + $0x70] sm:$0xff] }
 0x1d8   : > { %v580_v29 = vadd.f32 %v1877_v17, %v560_v25  ;;  %v563_v44 = vld [vmem:[#allocation2 + $0x38] sm:$0xff]  ;;  %v667_v55 = vadd.f32 %v1889_v35, %v647_v46  ;;  %682 = vst [vmem:[%s1848_s3 + $0x10] sm:$0xff] %v666_v54  ;;  %v632_v10 = vsel %vm600_vm8, %v584_v60, %v616_v3  ;;  %v587_v11 = vadd.f32 %v1877_v17, %v567_v1  ;;  %v568_v12 = vld [vmem:[#allocation2 + $0x60] sm:$0xff] }
 0x1d9   : > { %v561_v26 = vld [vmem:[#allocation2 + $0x28] sm:$0xff]  ;;  %v665_v51 = vadd.f32 %v1889_v35, %v645_v40  ;;  %v583_v57 = vadd.f32 %v1877_v17, %v563_v44  ;;  %680 = vst [vmem:[%s1848_s3] sm:$0xff] %v664_v50  ;;  %vm598_vm6 = vcmp.ge.f32.partialorder %v582_v56, 0.0  ;;  %v614_v0 = vmul.f32 0.01, %v582_v56  ;;  %v571_v31 = vld [vmem:[#allocation2 + $0x78] sm:$0xff] }
 0x1da   : > { %v581_v30 = vadd.f32 %v1877_v17, %v561_v26  ;;  %vm596_vm4 = vcmp.ge.f32.partialorder %v580_v29, 0.0  ;;  %v612_v38 = vmul.f32 0.01, %v580_v29  ;;  %683 = vst [vmem:[%s1848_s3 + $0x18] sm:$0xff] %v667_v55  ;;  %v652_v14 = vmul.f32 %v1883_v27, %v632_v10  ;;  %v569_v16 = vld [vmem:[#allocation2 + $0x68] sm:$0xff] }
 0x1db   : > { %681 = vst [vmem:[%s1848_s3 + $0x8] sm:$0xff] %v665_v51  ;;  %vm599_vm7 = vcmp.ge.f32.partialorder %v583_v57, 0.0  ;;  %v615_v2 = vmul.f32 0.01, %v583_v57  ;;  %v630_v5 = vsel %vm598_vm6, %v582_v56, %v614_v0  ;;  %v633_v15 = vsel %vm601_vm9, %v585_v61, %v617_v6 }
 0x1dc   : > { %v628_v47 = vsel %vm596_vm4, %v580_v29, %v612_v38  ;;  %vm597_vm5 = vcmp.ge.f32.partialorder %v581_v30, 0.0  ;;  %v613_v53 = vmul.f32 0.01, %v581_v30  ;;  %v650_v8 = vmul.f32 %v1883_v27, %v630_v5 }
 0x1dd   : > { %v648_v52 = vmul.f32 %v1883_v27, %v628_v47  ;;  %v631_v9 = vsel %vm599_vm7, %v583_v57, %v615_v2  ;;  %vm602_vm10 = vcmp.ge.f32.partialorder %v586_v7, 0.0  ;;  %v653_v20 = vmul.f32 %v1883_v27, %v633_v15 }
 0x1de   : > { %v629_v59 = vsel %vm597_vm5, %v581_v30, %v613_v53  ;;  %v651_v13 = vmul.f32 %v1883_v27, %v631_v9  ;;  %v670_v19 = vadd.f32 %v1889_v35, %v650_v8  ;;  %v618_v21 = vmul.f32 0.01, %v586_v7 }
 0x1df   : > { %v668_v58 = vadd.f32 %v1889_v35, %v648_v52  ;;  %v649_v63 = vmul.f32 %v1883_v27, %v629_v59  ;;  %vm603_vm11 = vcmp.ge.f32.partialorder %v587_v11, 0.0  ;;  %v672_v23 = vadd.f32 %v1889_v35, %v652_v14 }
 0x1e0   : > { %v671_v22 = vadd.f32 %v1889_v35, %v651_v13  ;;  %v619_v24 = vmul.f32 0.01, %v587_v11  ;;  %v588_v25 = vadd.f32 %v1877_v17, %v568_v12  ;;  %686 = vst [vmem:[%s1848_s3 + $0x30] sm:$0xff] %v670_v19  ;;  %v673_v26 = vadd.f32 %v1889_v35, %v653_v20 }
 0x1e1   : > { %684 = vst [vmem:[%s1848_s3 + $0x20] sm:$0xff] %v668_v58  ;;  %v669_v4 = vadd.f32 %v1889_v35, %v649_v63  ;;  %v634_v28 = vsel %vm602_vm10, %v586_v7, %v618_v21  ;;  %v589_v29 = vadd.f32 %v1877_v17, %v569_v16  ;;  %v590_v30 = vadd.f32 %v1877_v17, %v570_v18 }
 0x1e2   : > { %687 = vst [vmem:[%s1848_s3 + $0x38] sm:$0xff] %v671_v22  ;;  %688 = vst [vmem:[%s1848_s3 + $0x40] sm:$0xff] %v672_v23  ;;  %v654_v32 = vmul.f32 %v1883_v27, %v634_v28  ;;  %v635_v33 = vsel %vm603_vm11, %v587_v11, %v619_v24  ;;  %vm604_vm12 = vcmp.ge.f32.partialorder %v588_v25, 0.0  ;;  %v620_v34 = vmul.f32 0.01, %v588_v25 }
 0x1e3   : > { %685 = vst [vmem:[%s1848_s3 + $0x28] sm:$0xff] %v669_v4  ;;  %689 = vst [vmem:[%s1848_s3 + $0x48] sm:$0xff] %v673_v26  ;;  %v655_v36 = vmul.f32 %v1883_v27, %v635_v33  ;;  %vm605_vm13 = vcmp.ge.f32.partialorder %v589_v29, 0.0  ;;  %v621_v37 = vmul.f32 0.01, %v589_v29  ;;  %vm606_vm14 = vcmp.ge.f32.partialorder %v590_v30, 0.0 }
 0x1e4   : > { %v674_v38 = vadd.f32 %v1889_v35, %v654_v32  ;;  %v636_v39 = vsel %vm604_vm12, %v588_v25, %v620_v34  ;;  %v622_v40 = vmul.f32 0.01, %v590_v30  ;;  %v591_v41 = vadd.f32 %v1877_v17, %v571_v31 }
 0x1e5   : > { %v675_v42 = vadd.f32 %v1889_v35, %v655_v36  ;;  %v656_v43 = vmul.f32 %v1883_v27, %v636_v39  ;;  %v637_v44 = vsel %vm605_vm13, %v589_v29, %v621_v37 }
 0x1e6   : > { %690 = vst [vmem:[%s1848_s3 + $0x50] sm:$0xff] %v674_v38  ;;  %v657_v45 = vmul.f32 %v1883_v27, %v637_v44  ;;  %v638_v46 = vsel %vm606_vm14, %v590_v30, %v622_v40  ;;  %vm607_vm15 = vcmp.ge.f32.partialorder %v591_v41, 0.0  ;;  %v623_v47 = vmul.f32 0.01, %v591_v41 }
 0x1e7   : > { %691 = vst [vmem:[%s1848_s3 + $0x58] sm:$0xff] %v675_v42  ;;  %v676_v48 = vadd.f32 %v1889_v35, %v656_v43  ;;  %v658_v49 = vmul.f32 %v1883_v27, %v638_v46 }
 0x1e8   : > { %v677_v17 = vadd.f32 %v1889_v35, %v657_v45  ;;  %v639_v50 = vsel %vm607_vm15, %v591_v41, %v623_v47 }
 0x1e9   : > { %692 = vst [vmem:[%s1848_s3 + $0x60] sm:$0xff] %v676_v48  ;;  %v678_v51 = vadd.f32 %v1889_v35, %v658_v49  ;;  %v659_v52 = vmul.f32 %v1883_v27, %v639_v50 }
 0x1ea   : > { %693 = vst [vmem:[%s1848_s3 + $0x68] sm:$0xff] %v677_v17 }
 0x1eb   : > { %694 = vst [vmem:[%s1848_s3 + $0x70] sm:$0xff] %v678_v51  ;;  %v679_v53 = vadd.f32 %v1889_v35, %v659_v52 }
 0x1ed   : > { %695 = vst [vmem:[%s1848_s3 + $0x78] sm:$0xff] %v679_v53 }
 0x1ee PF: > { %s2131_s9 = sld [smem:[#allocation23_spill]]  ;;  %s2132_s10 = sld [smem:[#allocation22_spill]] }
 0x1ef   : > { %s712_s19 = sshll.u32 %s1848_s3, 4  ;;  %s2134_s26 = sld [smem:[#allocation31_spill]]  ;;  %s1952_s19 = int_to_ptr.vmem [resolvable:$true] %s712_s19 }
 0x1f0   : > { %s1961_s15 = scalar_lea.sflag [#allocation5], %s289_s7  ;;  %s1239_s20 = scalar_lea.vmem %s1952_s19, 2048 }
 0x1f1   : > { %p1240_p0 = scmp.ne.s32.totalorder %s1952_s19, %s1239_s20  ;;  %p2136_p6 = scmp.ne.s32.totalorder %s2117_s11, 0 }
 0x1f2   : > { %s1444_s3 = smov [#allocation9]  }
 0x1f3   : > { %p1241_p7 = pnand %p1240_p0, %p2136_p6  ;;  %s1243_s21 = sshll.u32 %s1444_s3, 4  ;;  %s1244_s21 = int_to_ptr.vmem [resolvable:$false] %s1243_s21 }
 0x1f4   : > { %s891_s2 = sshll.u32 %s2131_s9, 5  ;;  %s1245_s9 = scalar_lea.vmem %s1244_s21, 4096 }
 0x1f5   : > { %s709_s8 = sadd.s32 %s2132_s10, %s891_s2  ;;  %s2135_s5 = smov %s2134_s26 }
 0x1f6   : > { %s886_s16 = sshll.u32 %s709_s8, 7  ;;  %p1242_p11 = pneg %p1241_p7 }
 0x1f7   : > { %s1957_s25 = scalar_lea.hbm %s2134_s26, %s886_s16  ;;  %p1246_p1 = scmp.lt.s32.totalorder %s1952_s19, %s1244_s21 }
 0x1f8   : > { %p1247_p13 = scmp.lt.s32.totalorder %s1245_s9, %s1239_s20 }
 0x1fa   : > { %p1248_p2 = por %p1247_p13, %p1246_p1 }
 0x1fc   : > { %p1249_p3 = pnand %p1248_p2, %p1242_p11 }
 0x1fe   : > { %1252 = shalt.err (!%p1249_p3)
}
 0x1ff   : > { %s1253_s7 = scalar_lea.hbm %s1957_s25, 2048  ;;  %s1257_s2 = scalar_lea.hbm %s2135_s5, 16384 }
 0x200   : > { %p1254_p8 = scmp.ne.s32.totalorder %s1957_s25, %s1253_s7  ;;  %p1258_p9 = scmp.lt.u32.totalorder %s1957_s25, %s2135_s5 }
 0x201   : > { %p1259_p10 = scmp.lt.u32.totalorder %s1257_s2, %s1253_s7  ;;  %p1261_p0 = scmp.lt.u32.totalorder %s1253_s7, %s1957_s25 }
 0x202   : > { %p1255_p12 = pnand %p1254_p8, %p2136_p6 }
 0x203   : > { %p1260_p5 = por %p1259_p10, %p1258_p9 }
 0x204   : > { %p1256_p4 = pneg %p1255_p12 }
 0x205   : > { %p1262_p7 = por %p1261_p0, %p1260_p5 }
 0x207   : > { %p1263_p11 = pnand %p1262_p7, %p1256_p4 }
 0x209   : > { %1266 = shalt.err (!%p1263_p11)
}
 0x20a   : > { %s1445_s24 = smov 128   ;;  %s1446_s0 = smov 256  }
 0x20b   : > { %s1447_s26 = smov 8  }
 0x20c   : > { %962 = dma.vmem_to_hbm [thread:$0]  (%p2136_p6), %s1952_s19, 2048, %s1957_s25, %s1961_s15, %s1445_s24, %s1446_s0, %s1447_s26  }
 0x20d PF: > { %s2137_s20 = sld [smem:[#allocation14_spill]]  ;;  %p979_p1 = scmp.ge.s32.totalorder %s1433_s30, 2 }
 0x20e   : > { %p2138_p13 = scmp.ne.s32.totalorder %s2118_s4, 0 }
 0x210   : > { %p975_p2 = pnand %p979_p1, %p2138_p13 }
 0x213   : > { %s727_s3 = sand.u32 1, %s2137_s20  }
 0x214   : > { %s728_s21 = scalar_lea.sflag [#allocation5], %s727_s3 }
 0x215   : > { %1356 = dma.done.wait (!%p975_p2), %s728_s21, 2048  }
 0x216   : > { %1358 = vsyncadd (!%p975_p2), %s728_s21, 4294965248  ;;  %s22_s30 = sadd.s32 1, %s1433_s30   ;;  %s2140_s7 = sld [smem:[#allocation15_spill]] }
 0x217   : > { %p1990_p3 = scmp.ge.s32.totalorder %s22_s30, 18   ;;  %s2141_s15 = sld [smem:[#allocation17_spill]] }
 0x218   : > { %s2142_s11 = sld [smem:[#allocation19_spill]]  ;;  %s2143_s19 = sld [smem:[#allocation20_spill]] }
 0x219   : > { %s2144_s20 = sld [smem:[#allocation26_spill]]  ;;  %s2145_s4 = smov %s1683_s12 }
 0x21a   : > { %s2146_s10 = sld [smem:[#allocation24_spill]]  ;;  %s2148_s2 = sld [smem:[#allocation25_spill]] }
 0x21b   : > { %s2149_s13 = smov %s1369_s14  ;;  %s2150_s8 = sld [smem:[#allocation27_spill]] }
 0x21c   : > { %s2147_s12 = smov %s2140_s7  ;;  %s2151_s14 = smov %s1686_s1 }
 0x21d   : > { %s2152_s16 = smov %s1381_s17  ;;  %s2153_s17 = smov %s1757_s18 }
 0x21e   : > { %s2154_s18 = smov %s2142_s11  ;;  %s2155_s21 = smov %s1401_s22 }
 0x21f   : > { %s2156_s22 = smov %s1405_s23  ;;  %s2157_s23 = smov %s2145_s4 }
 0x220   : > { %s2158_s24 = smov %s1421_s27  ;;  %s2159_s25 = smov %s1425_s28 }
 0x221   : > { %s2160_s26 = smov %s1429_s29  ;;  %s2161_s27 = smov %s2146_s10 }
 0x222   : > { %s2162_s28 = smov %s2148_s2  ;;  %s2163_s29 = smov %s2150_s8 }
 0x223   :  { %21 = sbr.rel (!%p1990_p3) target bundleno = 20 (0x14), region = 109 }
 0x22a   :  { %733 = vsyncpa [#allocation4], 1 }
 0x22b   :  { %735 = vsyncpa [#allocation4 + $0x1], 1 }
 0x22c   :  { %736 = vsyncpa [#allocation7], 1 }
 0x22d   :  { %738 = vsyncpa [#allocation7 + $0x1], 1 }
 0x22e   :  { %739 = vsyncpa [#allocation5], 1 }
 0x22f   :  { %741 = vsyncpa [#allocation5 + $0x1], 1 }

</bundles_post_ra>
